<compile_context>
chip_gen: v7x
topology: tpu7x:2x2x1
jax: 0.10.0
libtpu: 0.0.40
codegen_flags: <defaults>
</compile_context>

<pallas_src>
import jax
import jax.numpy as jnp
from jax.experimental import pallas as pl
from jax.experimental.pallas import tpu as pltpu


def _round_up(x, m):
    return (x + m - 1) // m * m


def _largest_divisor_tile(total, align, max_tile):
    """Largest multiple of `align` that divides `total`, capped at `max_tile`."""
    t = min(max_tile, total)
    t = max((t // align) * align, align)
    while t > align and total % t != 0:
        t -= align
    return t


def _vmem_budget_bytes():
    """Generation-aware VMEM budget (v5e/v6e: 128 MiB, v7x: 64 MiB per TC)."""
    try:
        cap = int(pltpu.get_tpu_info().vmem_capacity_bytes)
    except Exception:  # interpret mode / query unavailable
        cap = 128 * 1024 * 1024
    return max(32 * 1024 * 1024, min(cap * 3 // 4, cap - (16 << 20)))


def _classifier_kernel(x_ref, w_ref, b_ref, zl_ref, out_ref, acc_ref):
    """Fused Linear data-encoder + label dot-product classifier.

    x_ref:   (tm, tk)        input tile (f32 or bf16; cast to bf16 on the VPU)
    w_ref:   (tk, E_pad)     bf16 encoder weight tile
    b_ref:   (1,  E_pad)     f32 encoder bias          (grid invariant)
    zl_ref:  (E_pad, C_pad)  bf16 pre-normalized, transposed label embeddings
    out_ref: (tm, C_pad)     f32 logits
    acc_ref: (tm, E_pad)     f32 accumulator scratch
    """
    k = pl.program_id(1)

    @pl.when(k == 0)
    def _init():
        acc_ref[...] = jnp.zeros_like(acc_ref)

    # Encoder matmul: bf16 x bf16 on the MXU, f32 accumulation.
    acc_ref[...] += jnp.dot(x_ref[...].astype(jnp.bfloat16), w_ref[...],
                            preferred_element_type=jnp.float32)

    # Epilogue only on the final reduction step: bias add (f32) and the
    # classifier matmul with bf16 operands / f32 accumulate.  Label L2
    # normalization is hoisted into the one-time wrapper prep.
    @pl.when(k == pl.num_programs(1) - 1)
    def _finalize():
        z = (acc_ref[...] + b_ref[...]).astype(jnp.bfloat16)
        out_ref[...] = jnp.dot(
            z, zl_ref[...], preferred_element_type=jnp.float32
        ).astype(out_ref.dtype)


def _prepare_params(enc_w, enc_b, emb_table, encoded_labels, normalize_label):
    """One-time (per parameter set) pad / cast / label-normalize pass.

    Deliberately split out of the per-batch hot path so full-weight pad/cast
    passes and label normalization are not re-materialized every forward.
    """
    D, E = enc_w.shape
    z_label = jnp.take(emb_table, encoded_labels, axis=0).astype(jnp.float32)
    C = z_label.shape[0]
    if normalize_label:
        # Matches PyTorch: a genuinely zero embedding row yields NaN/Inf.
        z_label = z_label / jnp.linalg.norm(z_label, axis=-1, keepdims=True)

    D_pad = _round_up(D, 128)
    E_pad = _round_up(E, 128)
    C_pad = _round_up(C, 128)          # lane-dense output stores

    w_p = jnp.zeros((D_pad, E_pad), jnp.bfloat16)
    w_p = w_p.at[:D, :E].set(enc_w.astype(jnp.bfloat16))
    b_p = jnp.zeros((1, E_pad), jnp.float32)
    b_p = b_p.at[0, :E].set(enc_b.astype(jnp.float32))
    # Pre-transposed to (E, C): MXU-native contraction, class dim on lanes.
    zl_p = jnp.zeros((E_pad, C_pad), jnp.bfloat16)
    zl_p = zl_p.at[:E, :C].set(z_label.T.astype(jnp.bfloat16))
    return dict(w_p=w_p, b_p=b_p, zl_p=zl_p, D=D, E=E, C=C,
                D_pad=D_pad, E_pad=E_pad, C_pad=C_pad)


def _apply(params, x_data):
    B = x_data.shape[0]
    x_flat = x_data.reshape(B, -1)
    D, D_pad = params["D"], params["D_pad"]
    E_pad, C_pad, C = params["E_pad"], params["C_pad"], params["C"]
    assert x_flat.shape[1] == D

    budget = _vmem_budget_bytes()
    max_tk = 4096 if budget >= (64 << 20) else 2048
    max_tm = 512

    # ---- tile selection: big per-step work, minimal zero padding -----------
    B8 = _round_up(B, 8)
    tm = _largest_divisor_tile(B8, 8, max_tm)
    if tm < 128 and B8 > 128:
        tm = 256           # accept some batch padding to keep W reuse high
    B_pad = _round_up(B8, tm)
    tk = _largest_divisor_tile(D_pad, 128, max_tk)

    x_bytes = jnp.dtype(x_flat.dtype).itemsize

    def vmem_est(tm_, tk_):
        return (2 * tm_ * tk_ * x_bytes          # x (double-buffered)
                + 2 * tk_ * E_pad * 2            # enc_w (bf16)
                + 2 * 1 * E_pad * 4              # bias
                + 2 * E_pad * C_pad * 2          # z_label.T (bf16)
                + 2 * tm_ * C_pad * 4            # out (f32)
                + tm_ * E_pad * 4)               # accumulator scratch

    while vmem_est(tm, tk) > budget and tk > 128:
        tk = _largest_divisor_tile(D_pad, 128, tk - 128)
    while vmem_est(tm, tk) > budget and tm > 8:
        tm = max(8, _round_up(tm // 2, 8))
        B_pad = _round_up(B8, tm)
    # TODO(synk): for very large class counts, add a class-tile grid axis so
    # z_label.T / out are tiled instead of held as one VMEM-resident block.

    # ---- x: skip the padded/cast wrapper copy when the shape is aligned ----
    if B_pad == B and D_pad == D:
        x_in = x_flat                        # kernel casts to bf16 on the VPU
    else:
        x_in = jnp.zeros((B_pad, D_pad), jnp.bfloat16)
        x_in = x_in.at[:B, :D].set(x_flat.astype(jnp.bfloat16))

    grid = (B_pad // tm, D_pad // tk)

    out = pl.pallas_call(
        _classifier_kernel,
        out_shape=jax.ShapeDtypeStruct((B_pad, C_pad), jnp.float32),
        grid_spec=pltpu.PrefetchScalarGridSpec(
            num_scalar_prefetch=0,
            grid=grid,
            in_specs=[
                pl.BlockSpec((tm, tk), lambda i, k: (i, k)),        # x
                pl.BlockSpec((tk, E_pad), lambda i, k: (k, 0)),     # enc_w
                pl.BlockSpec((1, E_pad), lambda i, k: (0, 0)),      # enc_b
                pl.BlockSpec((E_pad, C_pad), lambda i, k: (0, 0)),  # zl.T
            ],
            out_specs=pl.BlockSpec((tm, C_pad), lambda i, k: (i, 0)),
            scratch_shapes=[pltpu.VMEM((tm, E_pad), jnp.float32)],
        ),
        compiler_params=pltpu.CompilerParams(
            # batch tiles shard across v7x's 2 TensorCores; K is a reduction.
            dimension_semantics=("parallel", "arbitrary"),
            vmem_limit_bytes=int(budget),
        ),
    )(x_in, params["w_p"], params["b_p"], params["zl_p"])

    return out[:B, :C]


def label_encoder_classifier(x_data, encoded_labels, enc_w, enc_b, emb_table,
                             normalize_label=False):
    """Convenience one-shot API (prepare + apply).

    For repeated forward calls with fixed parameters, call _prepare_params
    once and reuse the result with _apply to keep the pad/cast/normalize
    passes out of the hot path.
    """
    params = _prepare_params(enc_w, enc_b, emb_table, encoded_labels,
                             normalize_label)
    return _apply(params, x_data)


def _reference(x_data, encoded_labels, enc_w, enc_b, emb_table,
               normalize_label):
    """Pure-JAX reference with the same bf16 operand quantization."""
    B = x_data.shape[0]
    x = x_data.reshape(B, -1).astype(jnp.bfloat16)
    w = enc_w.astype(jnp.bfloat16)
    z = jnp.dot(x, w, preferred_element_type=jnp.float32)
    z = z + enc_b.astype(jnp.float32)
    zl = jnp.take(emb_table, encoded_labels, axis=0).astype(jnp.float32)
    if normalize_label:
        zl = zl / jnp.linalg.norm(zl, axis=-1, keepdims=True)
    return jnp.dot(z.astype(jnp.bfloat16), zl.astype(jnp.bfloat16).T,
                   preferred_element_type=jnp.float32)


if __name__ == "__main__":
    # Small shapes consistent with the module: image batch -> out_dim logits.
    B, Cimg, H, W = 2, 4, 16, 16
    emb_dim = 32
    out_dim = 8          # n_classes

    key = jax.random.PRNGKey(0)
    k_x, k_w, k_b, k_emb = jax.random.split(key, 4)

    x_data = jax.random.normal(k_x, (B, Cimg, H, W), dtype=jnp.float32)
    encoded_labels = jnp.arange(out_dim, dtype=jnp.int32)

    D = Cimg * H * W
    # Deterministic parameter init (synthetic, not a checkpoint load).
    enc_w = jax.random.normal(k_w, (D, emb_dim), dtype=jnp.float32) * 0.02
    enc_b = jax.random.normal(k_b, (emb_dim,), dtype=jnp.float32) * 0.02
    emb_table = jax.random.normal(k_emb, (out_dim, emb_dim), dtype=jnp.float32)

    ok = True
    for norm_flag in (False, True):
        out = label_encoder_classifier(x_data, encoded_labels, enc_w, enc_b,
                                       emb_table, normalize_label=norm_flag)
        out = jax.block_until_ready(out)
        ref = _reference(x_data, encoded_labels, enc_w, enc_b, emb_table,
                         norm_flag)
        if out.shape != (B, out_dim):
            ok = False
        elif not jnp.allclose(out, ref, atol=1e-2, rtol=1e-2):
            ok = False

    if ok:
        print("KERNEL_OK")
</pallas_src>

<mosaic_0001>
module attributes {stable_mosaic.version = 11 : i64} {
  func.func @_classifier_kernel(%arg0: i32, %arg1: i32, %arg2: memref<8x1024xbf16, #tpu.memory_space<vmem>>, %arg3: memref<1024x128xbf16, #tpu.memory_space<vmem>>, %arg4: memref<1x128xf32, #tpu.memory_space<vmem>>, %arg5: memref<128x128xbf16, #tpu.memory_space<vmem>>, %arg6: memref<8x128xf32, #tpu.memory_space<vmem>>, %arg7: memref<8x128xf32, #tpu.memory_space<vmem>>) attributes {dimension_semantics = [#tpu.dimension_semantics<parallel>, #tpu.dimension_semantics<arbitrary>], iteration_bounds = array<i64: 1, 1>, scalar_prefetch = 0 : i64, scratch_operands = 1 : i64, tpu.core_type = #tpu.core_type<tc>, window_params = [{transform_indices = @transform_0, window_bounds = array<i64: 8, 1024>}, {transform_indices = @transform_1, window_bounds = array<i64: 1024, 128>}, {pipeline_mode = #tpu.pipeline_mode<synchronous>, transform_indices = @transform_2, window_bounds = array<i64: 1, 128>}, {pipeline_mode = #tpu.pipeline_mode<synchronous>, transform_indices = @transform_3, window_bounds = array<i64: 128, 128>}, {transform_indices = @transform_4, window_bounds = array<i64: 8, 128>}]} {
    %c0_i32 = arith.constant 0 : i32
    %0 = arith.cmpi eq, %arg1, %c0_i32 : i32
    %1 = arith.extui %0 : i1 to i32
    %c0_i32_0 = arith.constant 0 : i32
    %2 = arith.cmpi ne, %1, %c0_i32_0 : i32
    scf.if %2 {
      %cst_10 = arith.constant 0.000000e+00 : f32
      %12 = vector.broadcast %cst_10 : f32 to vector<8x128xf32>
      %c0_11 = arith.constant 0 : index
      %c0_12 = arith.constant 0 : index
      %13 = vector.load %arg7[%c0_11, %c0_12] : memref<8x128xf32, #tpu.memory_space<vmem>>, vector<8x128xf32>
      tpu.vector_store %arg7[%c0_11, %c0_12], %12 {strides = array<i32>} : memref<8x128xf32, #tpu.memory_space<vmem>>, vector<8x128xf32>,
    } else {
    }
    %c0 = arith.constant 0 : index
    %c0_1 = arith.constant 0 : index
    %3 = vector.load %arg7[%c0, %c0_1] : memref<8x128xf32, #tpu.memory_space<vmem>>, vector<8x128xf32>
    %c0_2 = arith.constant 0 : index
    %c0_3 = arith.constant 0 : index
    %4 = vector.load %arg2[%c0_2, %c0_3] : memref<8x1024xbf16, #tpu.memory_space<vmem>>, vector<8x1024xbf16>
    %c0_4 = arith.constant 0 : index
    %c0_5 = arith.constant 0 : index
    %5 = vector.load %arg3[%c0_4, %c0_5] : memref<1024x128xbf16, #tpu.memory_space<vmem>>, vector<1024x128xbf16>
    %cst = arith.constant dense<0.000000e+00> : vector<8x128xf32>
    %6 = tpu.matmul %4, %5, %cst {dimension_numbers = #tpu.dot_dimension_numbers<[1], [0], [0], [1], [0, 0, 1, 1], [], []>} : vector<8x1024xbf16>, vector<1024x128xbf16>, vector<8x128xf32> -> vector<8x128xf32>
    %7 = arith.addf %3, %6 : vector<8x128xf32>
    %c0_6 = arith.constant 0 : index
    %c0_7 = arith.constant 0 : index
    %8 = vector.load %arg7[%c0_6, %c0_7] : memref<8x128xf32, #tpu.memory_space<vmem>>, vector<8x128xf32>
    tpu.vector_store %arg7[%c0_6, %c0_7], %7 {strides = array<i32>} : memref<8x128xf32, #tpu.memory_space<vmem>>, vector<8x128xf32>,
    %c0_i32_8 = arith.constant 0 : i32
    %9 = arith.cmpi eq, %arg1, %c0_i32_8 : i32
    %10 = arith.extui %9 : i1 to i32
    %c0_i32_9 = arith.constant 0 : i32
    %11 = arith.cmpi ne, %10, %c0_i32_9 : i32
    scf.if %11 {
      %c0_10 = arith.constant 0 : index
      %c0_11 = arith.constant 0 : index
      %12 = vector.load %arg7[%c0_10, %c0_11] : memref<8x128xf32, #tpu.memory_space<vmem>>, vector<8x128xf32>
      %c0_12 = arith.constant 0 : index
      %c0_13 = arith.constant 0 : index
      %13 = vector.load %arg4[%c0_12, %c0_13] : memref<1x128xf32, #tpu.memory_space<vmem>>, vector<1x128xf32>
      %14 = vector.broadcast %13 : vector<1x128xf32> to vector<8x128xf32>
      %15 = arith.addf %12, %14 : vector<8x128xf32>
      %16 = arith.truncf %15 : vector<8x128xf32> to vector<8x128xbf16>
      %c0_14 = arith.constant 0 : index
      %c0_15 = arith.constant 0 : index
      %17 = vector.load %arg5[%c0_14, %c0_15] : memref<128x128xbf16, #tpu.memory_space<vmem>>, vector<128x128xbf16>
      %cst_16 = arith.constant dense<0.000000e+00> : vector<8x128xf32>
      %18 = tpu.matmul %16, %17, %cst_16 {dimension_numbers = #tpu.dot_dimension_numbers<[1], [0], [0], [1], [0, 0, 1, 1], [], []>} : vector<8x128xbf16>, vector<128x128xbf16>, vector<8x128xf32> -> vector<8x128xf32>
      %c0_17 = arith.constant 0 : index
      %c0_18 = arith.constant 0 : index
      %19 = vector.load %arg6[%c0_17, %c0_18] : memref<8x128xf32, #tpu.memory_space<vmem>>, vector<8x128xf32>
      tpu.vector_store %arg6[%c0_17, %c0_18], %18 {strides = array<i32>} : memref<8x128xf32, #tpu.memory_space<vmem>>, vector<8x128xf32>,
    } else {
    }
    return
  }
  func.func @transform_0(%arg0: i32, %arg1: i32) -> (i32, i32) {
    %c0_i32 = arith.constant 0 : i32
    return %arg0, %arg1 : i32, i32
  }
  func.func @transform_1(%arg0: i32, %arg1: i32) -> (i32, i32) {
    %c0_i32 = arith.constant 0 : i32
    %c0_i32_0 = arith.constant 0 : i32
    return %arg1, %c0_i32 : i32, i32
  }
  func.func @transform_2(%arg0: i32, %arg1: i32) -> (i32, i32) {
    %c0_i32 = arith.constant 0 : i32
    %c0_i32_0 = arith.constant 0 : i32
    %c0_i32_1 = arith.constant 0 : i32
    return %c0_i32, %c0_i32_0 : i32, i32
  }
  func.func @transform_3(%arg0: i32, %arg1: i32) -> (i32, i32) {
    %c0_i32 = arith.constant 0 : i32
    %c0_i32_0 = arith.constant 0 : i32
    %c0_i32_1 = arith.constant 0 : i32
    return %c0_i32, %c0_i32_0 : i32, i32
  }
  func.func @transform_4(%arg0: i32, %arg1: i32) -> (i32, i32) {
    %c0_i32 = arith.constant 0 : i32
    %c0_i32_0 = arith.constant 0 : i32
    return %arg0, %c0_i32 : i32, i32
  }
}

</mosaic_0001>

<bundles_post_ra>
// kernel: tpu_custom_call.1
= control target key start
LH: loop header
LB: loop body
LE: loop exit
PB: predicated region body
PF: predicated region fallthrough
CT: control target
= control target key end

     0   :  { %9 = vsyncpa [#allocation4], 0  ;;  %s1422_s0 = inlined_call_operand.hbm [shape: bf16[8,1024], index: 0, kind: input, shape index: {}]   ;;  %s1423_s1 = inlined_call_operand.hbm [shape: bf16[1024,128], index: 1, kind: input, shape index: {}]   ;;  %s1424_s2 = inlined_call_operand.hbm [shape: f32[1,128], index: 2, kind: input, shape index: {}]   ;;  %s1425_s3 = inlined_call_operand.hbm [shape: bf16[128,128], index: 3, kind: input, shape index: {}]   ;;  %s1426_s4 = inlined_call_operand.hbm [shape: f32[8,128], index: 4, kind: output, shape index: {}]  }
   0x1   :  { %10 = vsyncpa [#allocation7], 0 }
   0x2   :  { %11 = vsyncpa [#allocation10], 0 }
   0x3   :  { %12 = vsyncpa [#allocation5], 0  ;;  %s1322_s15 = smov [#allocation6]   ;;  %s1204_s19 = scalar_lea.hbm %s1423_s1, 8192 }
   0x4   :  { %s28_s16 = sshll.u32 %s1322_s15, 4  ;;  %p1205_p0 = scmp.ne.s32.totalorder %s1423_s1, %s1204_s19  ;;  %s29_s16 = int_to_ptr.vmem [resolvable:$true] %s28_s16 }
   0x5   :  { %p1208_p1 = scmp.lt.u32.totalorder %s1204_s19, %s1423_s1 }
   0x7   :  { %p1210_p2 = pnand %p1208_p1, %p1205_p0 }
   0x9   :  { %1213 = shalt.err (!%p1210_p2)
}
   0xa   :  { %s1214_s24 = scalar_lea.vmem %s29_s16, 8192  ;;  %p1219_p4 = scmp.lt.s32.totalorder %s29_s16, %s29_s16 }
   0xb   :  { %p1215_p3 = scmp.ne.s32.totalorder %s29_s16, %s1214_s24  ;;  %p1220_p5 = scmp.lt.s32.totalorder %s1214_s24, %s1214_s24 }
   0xd   :  { %p1221_p6 = por %p1220_p5, %p1219_p4 }
   0xf   :  { %p1222_p7 = pnand %p1221_p6, %p1215_p3 }
  0x11   :  { %1225 = shalt.err (!%p1222_p7)
}
  0x12   :  { %s1323_s25 = smov 64   ;;  %s1324_s26 = smov 4  }
  0x13   :  { %34 = dma.hbm_to_vmem [thread:$0]  %s1423_s1, 8192, %s29_s16, [#allocation7], %s1323_s25, %s1323_s25, %s1324_s26  }
  0x14   :  { %s1325_s29 = smov [#allocation3]   ;;  %s1326_s5 = smov [#allocation8]  }
  0x15   :  { %s19_s30 = sshll.u32 %s1325_s29, 4  ;;  %s41_s6 = sshll.u32 %s1326_s5, 4  ;;  %s20_s30 = int_to_ptr.vmem [resolvable:$true] %s19_s30  ;;  %s42_s6 = int_to_ptr.vmem [resolvable:$true] %s41_s6 }
  0x16   :  { %s1226_s9 = scalar_lea.hbm %s1422_s0, 512 }
  0x17   :  { %p1227_p8 = scmp.ne.s32.totalorder %s1422_s0, %s1226_s9  ;;  %p1230_p9 = scmp.lt.u32.totalorder %s1226_s9, %s1422_s0 }
  0x19   :  { %p1232_p10 = pnand %p1230_p9, %p1227_p8 }
  0x1b   :  { %1235 = shalt.err (!%p1232_p10)
}
  0x1c   :  { %s1236_s1 = scalar_lea.vmem %s20_s30, 512  ;;  %p1241_p12 = scmp.lt.s32.totalorder %s20_s30, %s20_s30 }
  0x1d   :  { %p1237_p11 = scmp.ne.s32.totalorder %s20_s30, %s1236_s1  ;;  %p1242_p13 = scmp.lt.s32.totalorder %s1236_s1, %s1236_s1 }
  0x1f   :  { %p1243_p0 = por %p1242_p13, %p1241_p12 }
  0x21   :  { %p1244_p1 = pnand %p1243_p0, %p1237_p11 }
  0x23   :  { %1247 = shalt.err (!%p1244_p1)
}
  0x24   :  { %22 = dma.hbm_to_vmem [thread:$0]  %s1422_s0, 512, %s20_s30, [#allocation4]  }
  0x25   :  { %s1248_s18 = scalar_lea.hbm %s1424_s2, 16 }
  0x26   :  { %p1249_p2 = scmp.ne.s32.totalorder %s1424_s2, %s1248_s18  ;;  %p1252_p3 = scmp.lt.u32.totalorder %s1248_s18, %s1424_s2 }
  0x28   :  { %p1254_p4 = pnand %p1252_p3, %p1249_p2 }
  0x2a   :  { %1257 = shalt.err (!%p1254_p4)
}
  0x2b   :  { %s1258_s23 = scalar_lea.vmem %s42_s6, 16  ;;  %s1262_s24 = scalar_lea.vmem %s42_s6, 32 }
  0x2c   :  { %p1259_p5 = scmp.ne.s32.totalorder %s42_s6, %s1258_s23  ;;  %p1263_p6 = scmp.lt.s32.totalorder %s42_s6, %s42_s6 }
  0x2d   :  { %p1264_p7 = scmp.lt.s32.totalorder %s1262_s24, %s1258_s23 }
  0x2f   :  { %p1265_p8 = por %p1264_p7, %p1263_p6 }
  0x31   :  { %p1266_p9 = pnand %p1265_p8, %p1259_p5 }
  0x33   :  { %1269 = shalt.err (!%p1266_p9)
}
  0x34   :  { %44 = dma.hbm_to_vmem [thread:$0]  %s1424_s2, 16, %s42_s6, [#allocation7]  }
  0x35   :  { %s1327_s28 = smov [#allocation9]   ;;  %s1270_s7 = scalar_lea.hbm %s1425_s3, 1024 }
  0x36   :  { %s50_s29 = sshll.u32 %s1327_s28, 4  ;;  %p1271_p10 = scmp.ne.s32.totalorder %s1425_s3, %s1270_s7  ;;  %s51_s29 = int_to_ptr.vmem [resolvable:$true] %s50_s29 }
  0x37   :  { %p1274_p11 = scmp.lt.u32.totalorder %s1270_s7, %s1425_s3 }
  0x39   :  { %p1276_p12 = pnand %p1274_p11, %p1271_p10 }
  0x3b   :  { %1279 = shalt.err (!%p1276_p12)
}
  0x3c   :  { %s1280_s12 = scalar_lea.vmem %s51_s29, 1024  ;;  %p1285_p0 = scmp.lt.s32.totalorder %s51_s29, %s51_s29 }
  0x3d   :  { %p1281_p13 = scmp.ne.s32.totalorder %s51_s29, %s1280_s12  ;;  %p1286_p1 = scmp.lt.s32.totalorder %s1280_s12, %s1280_s12 }
  0x3f   :  { %p1287_p2 = por %p1286_p1, %p1285_p0 }
  0x41   :  { %p1288_p3 = pnand %p1287_p2, %p1281_p13 }
  0x43   :  { %1291 = shalt.err (!%p1288_p3)
}
  0x44   :  { %56 = dma.hbm_to_vmem [thread:$0]  %s1425_s3, 1024, %s51_s29, [#allocation10], %s1323_s25, %s1323_s25, %s1324_s26  }
  0x45   :  { %1314 = dma.done.wait [#allocation4], 512  }
  0x46   :  { %1315 = vsyncadd [#allocation4], 4294966784 }
  0x47   :  { %1316 = dma.done.wait [#allocation7], 8208  }
  0x48   :  { %1317 = vsyncadd [#allocation7], 4294959088 }
  0x49   :  { %1318 = dma.done.wait [#allocation10], 1024  }
  0x4a   :  { %1319 = vsyncadd [#allocation10], 4294966272  ;;  %v1124_v0 = vld [vmem:[#allocation6 + $0x40] sm:$0xff]   ;;  %v1128_v4 = vld [vmem:[#allocation6 + $0x48] sm:$0xff]   ;;  %vm1329_vm0 = vmmov 0   ;;  %s1330_s3 = smov [#allocation11]  }
  0x4b   :  { %v1125_v1 = vld [vmem:[#allocation6 + $0xc0] sm:$0xff]   ;;  %998 = vmatprep.subr.bf16.mxu0 %v1124_v0  ;;  %v1129_v5 = vld [vmem:[#allocation6 + $0xc8] sm:$0xff]   ;;  %v1132_v8 = vld [vmem:[#allocation6 + $0x50] sm:$0xff]   ;;  %s906_s25 = sshll.u32 %s1330_s3, 4  ;;  %s907_s25 = int_to_ptr.vmem [resolvable:$true] %s906_s25 }
  0x4c   :  { %v1126_v2 = vld [vmem:[#allocation6] sm:$0xff]   ;;  %1020 = vmatprep.subr.bf16.mxu1 %v1125_v1  ;;  %v1130_v6 = vld [vmem:[#allocation6 + $0x8] sm:$0xff]   ;;  %v1133_v9 = vld [vmem:[#allocation6 + $0xd0] sm:$0xff]   ;;  %s1292_s26 = scalar_lea.vmem %s907_s25, 128  ;;  %p1297_p5 = scmp.lt.s32.totalorder %s907_s25, %s907_s25 }
  0x4d   :  { %v1127_v3 = vld [vmem:[#allocation6 + $0x80] sm:$0xff]   ;;  %999 = vmatpush3.bf16.msra.mxu0 %v1126_v2  ;;  %v1131_v7 = vld [vmem:[#allocation6 + $0x88] sm:$0xff]   ;;  %v1134_v10 = vld [vmem:[#allocation6 + $0x10] sm:$0xff]   ;;  %p1293_p4 = scmp.ne.s32.totalorder %s907_s25, %s1292_s26  ;;  %p1298_p6 = scmp.lt.s32.totalorder %s1292_s26, %s1292_s26 }
  0x4e   :  { %1021 = vmatpush3.bf16.msra.mxu1 %v1127_v3  ;;  %1000 = vmatprep.subr.bf16.mxu0 %v1128_v4  ;;  %v1135_v11 = vld [vmem:[#allocation6 + $0x90] sm:$0xff]   ;;  %v1136_v12 = vld [vmem:[#allocation6 + $0x58] sm:$0xff]   ;;  %v1140_v16 = vld [vmem:[#allocation6 + $0x60] sm:$0xff]  }
  0x4f   :  { %1022 = vmatprep.subr.bf16.mxu1 %v1129_v5  ;;  %v1137_v13 = vld [vmem:[#allocation6 + $0xd8] sm:$0xff]   ;;  %v1141_v17 = vld [vmem:[#allocation6 + $0xe0] sm:$0xff]   ;;  %v1144_v20 = vld [vmem:[#allocation6 + $0x68] sm:$0xff]   ;;  %p1299_p7 = por %p1298_p6, %p1297_p5 }
  0x50   :  { %v1138_v14 = vld [vmem:[#allocation6 + $0x18] sm:$0xff]   ;;  %v1142_v18 = vld [vmem:[#allocation6 + $0x20] sm:$0xff]   ;;  %v1145_v21 = vld [vmem:[#allocation6 + $0xe8] sm:$0xff]  }
  0x51   :  { %1001 = vmatpush3.bf16.msra.mxu0 %v1130_v6  ;;  %v1139_v15 = vld [vmem:[#allocation6 + $0x98] sm:$0xff]   ;;  %v1143_v19 = vld [vmem:[#allocation6 + $0xa0] sm:$0xff]   ;;  %v1146_v22 = vld [vmem:[#allocation6 + $0x28] sm:$0xff]   ;;  %p1300_p8 = pnand %p1299_p7, %p1293_p4 }
  0x52   :  { %1023 = vmatpush3.bf16.msra.mxu1 %v1131_v7  ;;  %1002 = vmatprep.subr.bf16.mxu0 %v1132_v8  ;;  %v1147_v23 = vld [vmem:[#allocation6 + $0xa8] sm:$0xff]   ;;  %v1148_v24 = vld [vmem:[#allocation6 + $0x70] sm:$0xff]   ;;  %v1152_v28 = vld [vmem:[#allocation6 + $0x78] sm:$0xff]  }
  0x53   :  { %1024 = vmatprep.subr.bf16.mxu1 %v1133_v9  ;;  %v1149_v25 = vld [vmem:[#allocation6 + $0xf0] sm:$0xff]   ;;  %v1153_v29 = vld [vmem:[#allocation6 + $0xf8] sm:$0xff]   ;;  %v76_v32 = vld [vmem:[#allocation3] sm:$0xff] }
  0x54   :  { %v1150_v26 = vld [vmem:[#allocation6 + $0x30] sm:$0xff]   ;;  %v1154_v30 = vld [vmem:[#allocation6 + $0x38] sm:$0xff]   ;;  %v77_v33 = vld [vmem:[#allocation3 + $0x8] sm:$0xff]  ;;  %v917_v34 = vcombine.low %v76_v32, %v76_v32  ;;  %v918_v35 = vcombine.high %v76_v32, %v76_v32 }
  0x55   :  { %1003 = vmatpush3.bf16.msra.mxu0 %v1134_v10  ;;  %v1151_v27 = vld [vmem:[#allocation6 + $0xb0] sm:$0xff]   ;;  %v1155_v31 = vld [vmem:[#allocation6 + $0xb8] sm:$0xff]   ;;  %v919_v36 = vcombine.low %v77_v33, %v77_v33  ;;  %v920_v37 = vcombine.high %v77_v33, %v77_v33  ;;  %v1160_v38 = vld [vmem:[#allocation6 + $0x140] sm:$0xff]  }
  0x56   :  { %1025 = vmatpush3.bf16.msra.mxu1 %v1135_v11  ;;  %1004 = vmatprep.subr.bf16.mxu0 %v1136_v12  ;;  %v1161_v39 = vld [vmem:[#allocation6 + $0x1c0] sm:$0xff]   ;;  %v1164_v42 = vld [vmem:[#allocation6 + $0x148] sm:$0xff]   ;;  %v1168_v46 = vld [vmem:[#allocation6 + $0x150] sm:$0xff]  }
  0x57   :  { %1026 = vmatprep.subr.bf16.mxu1 %v1137_v13  ;;  %652 = vmatprep.mubr.bf16.mxu0 %v918_v35  ;;  %v1162_v40 = vld [vmem:[#allocation6 + $0x100] sm:$0xff]   ;;  %v1165_v43 = vld [vmem:[#allocation6 + $0x1c8] sm:$0xff]   ;;  %v1169_v47 = vld [vmem:[#allocation6 + $0x1d0] sm:$0xff]   ;;  %v1328_v13 = vmov 0.0  }
  0x58   :  { %692 = vmatprep.mubr.bf16.mxu1 %v920_v37  ;;  %v1163_v41 = vld [vmem:[#allocation6 + $0x180] sm:$0xff]   ;;  %v1166_v44 = vld [vmem:[#allocation6 + $0x108] sm:$0xff]   ;;  %v1170_v48 = vld [vmem:[#allocation6 + $0x110] sm:$0xff]  }
  0x59   :  { %1005 = vmatpush3.bf16.msra.mxu0 %v1138_v14  ;;  %v1167_v45 = vld [vmem:[#allocation6 + $0x188] sm:$0xff]   ;;  %v1171_v49 = vld [vmem:[#allocation6 + $0x190] sm:$0xff]   ;;  %v1172_v50 = vld [vmem:[#allocation6 + $0x158] sm:$0xff]  }
  0x5a   :  { %1027 = vmatpush3.bf16.msra.mxu1 %v1139_v15  ;;  %1006 = vmatprep.subr.bf16.mxu0 %v1140_v16  ;;  %v1173_v51 = vld [vmem:[#allocation6 + $0x1d8] sm:$0xff]   ;;  %v1176_v54 = vld [vmem:[#allocation6 + $0x160] sm:$0xff]   ;;  %v1180_v58 = vld [vmem:[#allocation6 + $0x168] sm:$0xff]  }
  0x5b   :  { %1028 = vmatprep.subr.bf16.mxu1 %v1141_v17  ;;  %v1174_v52 = vld [vmem:[#allocation6 + $0x118] sm:$0xff]   ;;  %v1177_v55 = vld [vmem:[#allocation6 + $0x1e0] sm:$0xff]   ;;  %v1181_v59 = vld [vmem:[#allocation6 + $0x1e8] sm:$0xff]  }
  0x5c   :  { %v1175_v53 = vld [vmem:[#allocation6 + $0x198] sm:$0xff]   ;;  %v1178_v56 = vld [vmem:[#allocation6 + $0x120] sm:$0xff]   ;;  %v1182_v60 = vld [vmem:[#allocation6 + $0x128] sm:$0xff]  }
  0x5d   :  { %1007 = vmatpush3.bf16.msra.mxu0 %v1142_v18  ;;  %v1179_v57 = vld [vmem:[#allocation6 + $0x1a0] sm:$0xff]   ;;  %v1183_v61 = vld [vmem:[#allocation6 + $0x1a8] sm:$0xff]   ;;  %v1184_v62 = vld [vmem:[#allocation6 + $0x170] sm:$0xff]  }
  0x5e   :  { %1029 = vmatpush3.bf16.msra.mxu1 %v1143_v19  ;;  %1008 = vmatprep.subr.bf16.mxu0 %v1144_v20  ;;  %v1185_v63 = vld [vmem:[#allocation6 + $0x1f0] sm:$0xff]   ;;  %v1188_v2 = vld [vmem:[#allocation6 + $0x178] sm:$0xff]   ;;  %v1196_v12 = vld [vmem:[#allocation9] sm:$0xff]  }
  0x5f   :  { %1030 = vmatprep.subr.bf16.mxu1 %v1145_v21  ;;  %v1186_v0 = vld [vmem:[#allocation6 + $0x130] sm:$0xff]   ;;  %v1189_v3 = vld [vmem:[#allocation6 + $0x1f8] sm:$0xff]   ;;  %v1200_v17 = vld [vmem:[#allocation9 + $0x20] sm:$0xff]  }
  0x60   :  { %v1187_v1 = vld [vmem:[#allocation6 + $0x1b0] sm:$0xff]   ;;  %v1190_v4 = vld [vmem:[#allocation6 + $0x138] sm:$0xff]  }
  0x61   :  { %1009 = vmatpush3.bf16.msra.mxu0 %v1146_v22  ;;  %v1191_v5 = vld [vmem:[#allocation6 + $0x1b8] sm:$0xff]   ;;  %v78_v6 = vld [vmem:[#allocation3 + $0x10] sm:$0xff] }
  0x62   :  { %1031 = vmatpush3.bf16.msra.mxu1 %v1147_v23  ;;  %1010 = vmatprep.subr.bf16.mxu0 %v1148_v24  ;;  %v921_v7 = vcombine.low %v78_v6, %v78_v6  ;;  %v922_v8 = vcombine.high %v78_v6, %v78_v6  ;;  %v79_v9 = vld [vmem:[#allocation3 + $0x18] sm:$0xff]  ;;  %v1197_v14 = vld [vmem:[#allocation9 + $0x8] sm:$0xff]  }
  0x63   :  { %1032 = vmatprep.subr.bf16.mxu1 %v1149_v25  ;;  %v923_v10 = vcombine.low %v79_v9, %v79_v9  ;;  %v924_v11 = vcombine.high %v79_v9, %v79_v9  ;;  %v1198_v15 = vld [vmem:[#allocation9 + $0x10] sm:$0xff]   ;;  %v1199_v16 = vld [vmem:[#allocation9 + $0x18] sm:$0xff]   ;;  %v1201_v18 = vld [vmem:[#allocation9 + $0x28] sm:$0xff]  }
  0x64   :  { %v1202_v19 = vld [vmem:[#allocation9 + $0x30] sm:$0xff]   ;;  %v1203_v20 = vld [vmem:[#allocation9 + $0x38] sm:$0xff]  }
  0x65   :  { %1011 = vmatpush3.bf16.msra.mxu0 %v1150_v26 }
  0x66   :  { %1033 = vmatpush3.bf16.msra.mxu1 %v1151_v27  ;;  %1012 = vmatprep.subr.bf16.mxu0 %v1152_v28 }
  0x67   :  { %1034 = vmatprep.subr.bf16.mxu1 %v1153_v29 }
  0x69   :  { %1013 = vmatpush3.bf16.msra.mxu0 %v1154_v30 }
  0x6a   :  { %1035 = vmatpush3.bf16.msra.mxu1 %v1155_v31  ;;  %1042 = vmatprep.subr.bf16.mxu0 %v1160_v38 }
  0x6b   :  { %1064 = vmatprep.subr.bf16.mxu1 %v1161_v39 }
  0x6c   :  { %653 = vmatmul.mubr.bf16.vlgmr.msra.gmra.mrb[0].mxu0 %v917_v34 }
  0x6d   :  { %693 = vmatmul.mubr.bf16.vlgmr.msra.gmra.mrb[0].mxu1 %v919_v36  ;;  %1043 = vmatpush3.bf16.msra.mxu0 %v1162_v40 }
  0x6e   :  { %1065 = vmatpush3.bf16.msra.mxu1 %v1163_v41  ;;  %1044 = vmatprep.subr.bf16.mxu0 %v1164_v42 }
  0x6f   :  { %1066 = vmatprep.subr.bf16.mxu1 %v1165_v43  ;;  %732 = vmatprep.mubr.bf16.mxu0 %v922_v8  ;;  %v989_v43 = vld [vmem:[#allocation8] ss:$0 sm:$0xff] }
  0x70   :  { %772 = vmatprep.mubr.bf16.mxu1 %v924_v11 }
  0x71   :  { %1045 = vmatpush3.bf16.msra.mxu0 %v1166_v44 }
  0x72   :  { %1067 = vmatpush3.bf16.msra.mxu1 %v1167_v45  ;;  %1046 = vmatprep.subr.bf16.mxu0 %v1168_v46 }
  0x73   :  { %1068 = vmatprep.subr.bf16.mxu1 %v1169_v47 }
  0x75   :  { %1047 = vmatpush3.bf16.msra.mxu0 %v1170_v48 }
  0x76   :  { %1069 = vmatpush3.bf16.msra.mxu1 %v1171_v49  ;;  %1048 = vmatprep.subr.bf16.mxu0 %v1172_v50 }
  0x77   :  { %1070 = vmatprep.subr.bf16.mxu1 %v1173_v51 }
  0x79   :  { %1049 = vmatpush3.bf16.msra.mxu0 %v1174_v52 }
  0x7a   :  { %1071 = vmatpush3.bf16.msra.mxu1 %v1175_v53  ;;  %1050 = vmatprep.subr.bf16.mxu0 %v1176_v54 }
  0x7b   :  { %1072 = vmatprep.subr.bf16.mxu1 %v1177_v55 }
  0x7d   :  { %1051 = vmatpush3.bf16.msra.mxu0 %v1178_v56 }
  0x7e   :  { %1073 = vmatpush3.bf16.msra.mxu1 %v1179_v57  ;;  %1052 = vmatprep.subr.bf16.mxu0 %v1180_v58 }
  0x7f   :  { %1074 = vmatprep.subr.bf16.mxu1 %v1181_v59 }
  0x81   :  { %1053 = vmatpush3.bf16.msra.mxu0 %v1182_v60 }
  0x82   :  { %1075 = vmatpush3.bf16.msra.mxu1 %v1183_v61  ;;  %1054 = vmatprep.subr.bf16.mxu0 %v1184_v62 }
  0x83   :  { %1076 = vmatprep.subr.bf16.mxu1 %v1185_v63 }
  0x85   :  { %1055 = vmatpush3.bf16.msra.mxu0 %v1186_v0 }
  0x86   :  { %1077 = vmatpush3.bf16.msra.mxu1 %v1187_v1  ;;  %1056 = vmatprep.subr.bf16.mxu0 %v1188_v2 }
  0x87   :  { %1078 = vmatprep.subr.bf16.mxu1 %v1189_v3 }
  0x89   :  { %1057 = vmatpush3.bf16.msra.mxu0 %v1190_v4 }
  0x8a   :  { %1079 = vmatpush3.bf16.msra.mxu1 %v1191_v5  ;;  %1095 = vmatprep.subr.bf16.mxu0 %v1328_v13 }
  0x8c   :  { %733 = vmatmul.mubr.bf16.vlgmr.msra.gmra.mrb[4].mxu0 %v921_v7 }
  0x8d   :  { %773 = vmatmul.mubr.bf16.vlgmr.msra.gmra.mrb[4].mxu1 %v923_v10  ;;  %1096 = vmatpush3.bf16.msra.mxu0 %v1196_v12 }
  0x8e   :  { %1097 = vmatprep.subr.bf16.mxu0 %v1328_v13  ;;  %1111 = vmatprep.mubr.msk.bf16.mxu0 %vm1329_vm0, %v1328_v13 }
  0x91   :  { %1098 = vmatpush3.bf16.msra.mxu0 %v1197_v14 }
  0x92   :  { %1099 = vmatprep.subr.bf16.mxu0 %v1328_v13 }
  0x95   :  { %1100 = vmatpush3.bf16.msra.mxu0 %v1198_v15 }
  0x96   :  { %1101 = vmatprep.subr.bf16.mxu0 %v1328_v13 }
  0x99   :  { %1102 = vmatpush3.bf16.msra.mxu0 %v1199_v16 }
  0x9a   :  { %1103 = vmatprep.subr.bf16.mxu0 %v1328_v13 }
  0x9d   :  { %1104 = vmatpush3.bf16.msra.mxu0 %v1200_v17 }
  0x9e   :  { %1105 = vmatprep.subr.bf16.mxu0 %v1328_v13 }
  0xa1   :  { %1106 = vmatpush3.bf16.msra.mxu0 %v1201_v18 }
  0xa2   :  { %1107 = vmatprep.subr.bf16.mxu0 %v1328_v13 }
  0xa5   :  { %1108 = vmatpush3.bf16.msra.mxu0 %v1202_v19 }
  0xa6   :  { %1109 = vmatprep.subr.bf16.mxu0 %v1328_v13 }
  0xa9   :  { %1110 = vmatpush3.bf16.msra.mxu0 %v1203_v20 }
 0x13f   :  { %v1014_v21 = vpop.f32.mrb[0].mxu0 }
 0x140   :  { %v1036_v22 = vpop.f32.mrb[0].mxu1  ;;  %v1015_v23 = vpop.f32.mrb[1].mxu0 }
 0x141   :  { %v1037_v24 = vpop.f32.mrb[1].mxu1  ;;  %v1016_v25 = vadd.f32 %v1015_v23, %v1014_v21  ;;  %v1017_v27 = vpop.f32.mrb[2].mxu0 }
 0x142   :  { %v1038_v26 = vadd.f32 %v1037_v24, %v1036_v22  ;;  %v1039_v28 = vpop.f32.mrb[2].mxu1  ;;  %v1018_v29 = vpop.f32.mrb[3].mxu0 }
 0x143   :  { %v1040_v30 = vpop.f32.mrb[3].mxu1 }
 0x144   :  { %v695_v31 = vadd.f32 %v1038_v26, %v1016_v25 }
 0x15f   :  { %v1058_v32 = vpop.f32.mrb[4].mxu0 }
 0x160   :  { %v1080_v33 = vpop.f32.mrb[4].mxu1  ;;  %v1059_v34 = vpop.f32.mrb[5].mxu0 }
 0x161   :  { %v1081_v35 = vpop.f32.mrb[5].mxu1  ;;  %v1060_v36 = vadd.f32 %v1059_v34, %v1058_v32  ;;  %v1061_v38 = vpop.f32.mrb[6].mxu0 }
 0x162   :  { %v1082_v37 = vadd.f32 %v1081_v35, %v1080_v33  ;;  %v1083_v39 = vpop.f32.mrb[6].mxu1  ;;  %v1062_v40 = vpop.f32.mrb[7].mxu0 }
 0x163   :  { %v1084_v41 = vpop.f32.mrb[7].mxu1  ;;  %v735_v42 = vadd.f32 %v1060_v36, %v695_v31 }
 0x165   :  { %v775_v44 = vadd.f32 %v1082_v37, %v735_v42 }
 0x167   :  { %v793_v45 = vadd.f32 %v989_v43, %v775_v44 }
 0x169   :  { %v794_v46 = vpack.c.bf16 %v793_v45, %v793_v45 }
 0x16b   :  { %1112 = vmatmul.mubr.bf16.vlgmr.msra.gmra.mrb[8].mxu0 %v794_v46 }
 0x23e   :  { %v893_v47 = vpop.f32.mrb[8].mxu0 }
 0x23f   :  { %899 = vst [vmem:[#allocation11] sm:$0xff] %v893_v47  ;;  %v1113_v48 = vpop.f32.mrb[9].mxu0 }
 0x240   :  { %v896_v49 = vpop.f32.mrb[10].mxu0 }
 0x241   :  { %1303 = shalt.err (!%p1300_p8)
}
 0x242   :  { %s1304_s14 = scalar_lea.hbm %s1426_s4, 128 }
 0x243   :  { %p1305_p9 = scmp.ne.s32.totalorder %s1426_s4, %s1304_s14  ;;  %p1308_p10 = scmp.lt.u32.totalorder %s1304_s14, %s1426_s4 }
 0x245   :  { %p1310_p11 = pnand %p1308_p10, %p1305_p9 }
 0x247   :  { %1313 = shalt.err (!%p1310_p11)
}
 0x248   :  { %909 = dma.vmem_to_hbm [thread:$0]  %s907_s25, 128, %s1426_s4, [#allocation5]   ;;  %v1114_v50 = vpop.f32.mrb[11].mxu0 }
 0x249   :  { %1320 = dma.done.wait [#allocation5], 128  }
 0x24a   :  { %1321 = vsyncadd [#allocation5], 4294967168 }
 0x24b   :  { %913 = vsyncpa [#allocation4], 1 }
 0x24c   :  { %914 = vsyncpa [#allocation7], 1 }
 0x24d   :  { %915 = vsyncpa [#allocation10], 1 }
 0x24e   :  { %916 = vsyncpa [#allocation5], 1 }

</bundles_post_ra>
